<compile_context>
chip_gen: v6e
topology: v6e:2x2x1
jax: 0.10.0
libtpu: 0.0.40
codegen_flags: <defaults>
</compile_context>

<pallas_src>
import jax
import jax.numpy as jnp
from jax.experimental import pallas as pl
from jax.experimental.pallas import tpu as pltpu

MIN_LOG_VAR = -5.0
MAX_LOG_VAR = -1.0
HIDDEN = 256
LANES = 128


def _round_up(x, m):
    return ((x + m - 1) // m) * m


def _dynamics_mlp_kernel(x_ref, w1_ref, b1_ref, w2_ref, b2_ref, w3_ref, b3_ref, out_ref):
    """Fused MLP dynamics-model forward for one batch tile.

    x_ref   : [TB, SP]   padded input: lanes [0,S)=states, [S,S+A)=actions, rest zero (f32)
    w1_ref  : [SP, H]    fc1 weights (bf16; state rows + action rows, padded rows zero)
    w2_ref  : [H,  H]    fc2 weights (bf16)
    w3_ref  : [H, 2*SP]  merged output head (bf16; mean head in cols [0,SP), log-var in [SP,2SP))
    b*_ref  : f32 biases
    out_ref : [TB, 2*SP] packed output: mean in lanes [0,SP), var in [SP,2SP)
    """
    x = x_ref[...]                       # [TB, SP] f32
    sp = x.shape[-1]

    # fc1 + ReLU  (concat is folded into the padded input / weight)
    h1 = jnp.dot(x.astype(jnp.bfloat16), w1_ref[...],
                 preferred_element_type=jnp.float32)
    h1 = jnp.maximum(h1 + b1_ref[...], 0.0)

    # fc2 + ReLU
    h2 = jnp.dot(h1.astype(jnp.bfloat16), w2_ref[...],
                 preferred_element_type=jnp.float32)
    h2 = jnp.maximum(h2 + b2_ref[...], 0.0)

    # merged output head: one 256-wide MXU pass for both mean and log-var heads
    out = jnp.dot(h2.astype(jnp.bfloat16), w3_ref[...],
                  preferred_element_type=jnp.float32) + b3_ref[...]   # [TB, 2*SP] f32

    # split at the 128-aligned lane boundary (vreg-aligned, no relayout)
    delta_mean = out[:, :sp]
    log_var = out[:, sp:]

    # bounded log-variance: sigmoid -> [min, max] -> exp  (f32 epilogue)
    log_var = jax.nn.sigmoid(log_var)
    log_var = MIN_LOG_VAR + (MAX_LOG_VAR - MIN_LOG_VAR) * log_var
    var = jnp.exp(log_var)

    # residual: next_states_mean = delta_mean + states
    # (pad lanes S..S+A-1 pick up the action values; sliced off by the wrapper)
    mean = delta_mean + x

    # two 128-aligned lane-dense stores into the single packed output slab
    out_ref[:, :sp] = mean
    out_ref[:, sp:] = var


def dynamics_forward(states, actions, kparams):
    """Matches Model.forward(states, actions) -> (next_states_mean, var)."""
    w1p, b1, w2, b2, w3p, b3p = kparams
    B, S = states.shape
    A = actions.shape[-1]
    SP, H = w1p.shape
    SP2 = w3p.shape[1]            # 2 * SP

    # Single fused pad/concat: lanes [0,S)=states, [S,S+A)=actions, remainder zero.
    pad = SP - S - A
    states_p = jnp.concatenate(
        [states.astype(jnp.float32),
         actions.astype(jnp.float32),
         jnp.zeros((B, pad), jnp.float32)], axis=-1)

    # Batch tiling: big tiles to amortize per-step overhead; at large B keep >= 2 grid
    # steps (multiples of 256) so both v7x TensorCores get work via "parallel".
    if B >= 512:
        tile_b = min(1024, _round_up(pl.cdiv(B, 2), 256))
    else:
        tile_b = _round_up(min(B, 256), 8)
    grid = (pl.cdiv(B, tile_b),)

    def bspec(cols):
        return pl.BlockSpec((tile_b, cols), lambda i: (i, 0))

    def resident(shape):
        return pl.BlockSpec(shape, lambda i: (0, 0))

    flops = 2 * B * (SP * H + H * H + H * SP2)
    param_bytes = sum(int(p.size) * p.dtype.itemsize for p in kparams)
    bytes_accessed = (int(states_p.size) + B * SP2) * 4 + param_bytes
    cost = pl.CostEstimate(flops=flops, transcendentals=2 * B * SP,
                           bytes_accessed=bytes_accessed)

    packed = pl.pallas_call(
        _dynamics_mlp_kernel,
        out_shape=jax.ShapeDtypeStruct((B, SP2), jnp.float32),
        grid=grid,
        in_specs=[
            bspec(SP),            # padded states+actions — tiled along batch
            resident((SP, H)),    # fc1 weights (bf16, state+action rows)
            resident((1, H)),     # b1
            resident((H, H)),     # fc2 weights (bf16)
            resident((1, H)),     # b2
            resident((H, SP2)),   # merged output-head weights (bf16)
            resident((1, SP2)),   # merged output-head bias
        ],
        out_specs=bspec(SP2),
        compiler_params=pltpu.CompilerParams(
            dimension_semantics=("parallel",)),
        cost_estimate=cost,
    )(states_p, w1p, b1, w2, b2, w3p, b3p)

    # Slice the packed/padded output back to the logical state width.
    return packed[:, :S], packed[:, SP:SP + S]


def init_params(key, state_dim, action_dim, hidden=HIDDEN):
    """PyTorch nn.Linear-style init, weights stored as [in_features, out_features]."""
    def linear(k, fan_in, fan_out):
        kw, kb = jax.random.split(k)
        bound = 1.0 / jnp.sqrt(fan_in)
        w = jax.random.uniform(kw, (fan_in, fan_out), jnp.float32, -bound, bound)
        b = jax.random.uniform(kb, (1, fan_out), jnp.float32, -bound, bound)
        return w, b

    k1, k2, k3 = jax.random.split(key, 3)
    w1, b1 = linear(k1, state_dim + action_dim, hidden)
    w2, b2 = linear(k2, hidden, hidden)
    w3, b3 = linear(k3, hidden, 2 * state_dim)
    return (w1, b1, w2, b2, w3, b3)


def prepare_kernel_params(raw_params, state_dim, action_dim):
    """One-time lane-pad / head-merge / bf16-cast of the PyTorch-layout params."""
    w1, b1, w2, b2, w3, b3 = raw_params
    hidden = w1.shape[1]
    sp = max(LANES, _round_up(state_dim + action_dim, LANES))

    # fc1: state rows [0,S), action rows [S,S+A), rest zero (zero rows are a matmul no-op).
    w1p = jnp.zeros((sp, hidden), jnp.bfloat16).at[:state_dim + action_dim].set(
        w1.astype(jnp.bfloat16))

    # merged output head: mean-head cols in lanes [0,S), log-var-head cols in [sp, sp+S).
    w3p = jnp.zeros((hidden, 2 * sp), jnp.bfloat16)
    w3p = w3p.at[:, :state_dim].set(w3[:, :state_dim].astype(jnp.bfloat16))
    w3p = w3p.at[:, sp:sp + state_dim].set(w3[:, state_dim:].astype(jnp.bfloat16))
    b3p = jnp.zeros((1, 2 * sp), jnp.float32)
    b3p = b3p.at[:, :state_dim].set(b3[:, :state_dim])
    b3p = b3p.at[:, sp:sp + state_dim].set(b3[:, state_dim:])

    return (w1p, b1.astype(jnp.float32),
            w2.astype(jnp.bfloat16), b2.astype(jnp.float32),
            w3p, b3p)


def dynamics_reference(states, actions, raw_params):
    """Pure-JAX f32 reference of Model.forward (for correctness checking)."""
    w1, b1, w2, b2, w3, b3 = raw_params
    x = jnp.concatenate([states, actions], axis=-1)
    h1 = jnp.maximum(x @ w1 + b1, 0.0)
    h2 = jnp.maximum(h1 @ w2 + b2, 0.0)
    out = h2 @ w3 + b3
    s = states.shape[-1]
    delta_mean, log_var = out[:, :s], out[:, s:]
    log_var = jax.nn.sigmoid(log_var)
    log_var = MIN_LOG_VAR + (MAX_LOG_VAR - MIN_LOG_VAR) * log_var
    return delta_mean + states, jnp.exp(log_var)


# TODO(synk): only Model.forward is implemented; loss/update/generate_data/predict are
# training/optimizer/replay-buffer logic with no Pallas-kernel equivalent.

if __name__ == "__main__":
    # small shapes consistent with the module: state_shape=(4,), action_shape=(2,)
    B, S, A = 8, 4, 2

    key = jax.random.PRNGKey(0)
    kp, ks, ka = jax.random.split(key, 3)

    raw = init_params(kp, S, A)
    kparams = prepare_kernel_params(raw, S, A)

    states = jax.random.normal(ks, (B, S), jnp.float32)
    actions = jax.random.normal(ka, (B, A), jnp.float32)

    fwd = jax.jit(dynamics_forward)
    mean, var = fwd(states, actions, kparams)
    jax.block_until_ready((mean, var))

    assert mean.shape == (B, S) and var.shape == (B, S)
    assert bool(jnp.all(var > 0.0))

    # bf16-matmul kernel vs f32 reference: loose but meaningful tolerance.
    ref_mean, ref_var = dynamics_reference(states, actions, raw)
    assert float(jnp.max(jnp.abs(mean - ref_mean))) < 5e-2
    assert float(jnp.max(jnp.abs(var - ref_var))) < 5e-2

    print("KERNEL_OK")
</pallas_src>

<mosaic_0001>
module attributes {stable_mosaic.version = 11 : i64} {
  func.func @_dynamics_mlp_kernel(%arg0: i32, %arg1: memref<8x128xf32, #tpu.memory_space<vmem>>, %arg2: memref<128x256xbf16, #tpu.memory_space<vmem>>, %arg3: memref<1x256xf32, #tpu.memory_space<vmem>>, %arg4: memref<256x256xbf16, #tpu.memory_space<vmem>>, %arg5: memref<1x256xf32, #tpu.memory_space<vmem>>, %arg6: memref<256x256xbf16, #tpu.memory_space<vmem>>, %arg7: memref<1x256xf32, #tpu.memory_space<vmem>>, %arg8: memref<8x256xf32, #tpu.memory_space<vmem>>) attributes {dimension_semantics = [#tpu.dimension_semantics<parallel>], iteration_bounds = array<i64: 1>, scalar_prefetch = 0 : i64, scratch_operands = 0 : i64, tpu.core_type = #tpu.core_type<tc>, window_params = [{transform_indices = @transform_0, window_bounds = array<i64: 8, 128>}, {pipeline_mode = #tpu.pipeline_mode<synchronous>, transform_indices = @transform_1, window_bounds = array<i64: 128, 256>}, {pipeline_mode = #tpu.pipeline_mode<synchronous>, transform_indices = @transform_2, window_bounds = array<i64: 1, 256>}, {pipeline_mode = #tpu.pipeline_mode<synchronous>, transform_indices = @transform_3, window_bounds = array<i64: 256, 256>}, {pipeline_mode = #tpu.pipeline_mode<synchronous>, transform_indices = @transform_4, window_bounds = array<i64: 1, 256>}, {pipeline_mode = #tpu.pipeline_mode<synchronous>, transform_indices = @transform_5, window_bounds = array<i64: 256, 256>}, {pipeline_mode = #tpu.pipeline_mode<synchronous>, transform_indices = @transform_6, window_bounds = array<i64: 1, 256>}, {transform_indices = @transform_7, window_bounds = array<i64: 8, 256>}]} {
    %c0 = arith.constant 0 : index
    %c0_0 = arith.constant 0 : index
    %0 = vector.load %arg1[%c0, %c0_0] : memref<8x128xf32, #tpu.memory_space<vmem>>, vector<8x128xf32>
    %1 = arith.truncf %0 : vector<8x128xf32> to vector<8x128xbf16>
    %c0_1 = arith.constant 0 : index
    %c0_2 = arith.constant 0 : index
    %2 = vector.load %arg2[%c0_1, %c0_2] : memref<128x256xbf16, #tpu.memory_space<vmem>>, vector<128x256xbf16>
    %cst = arith.constant dense<0.000000e+00> : vector<8x256xf32>
    %3 = tpu.matmul %1, %2, %cst {dimension_numbers = #tpu.dot_dimension_numbers<[1], [0], [0], [1], [0, 0, 1, 1], [], []>} : vector<8x128xbf16>, vector<128x256xbf16>, vector<8x256xf32> -> vector<8x256xf32>
    %c0_3 = arith.constant 0 : index
    %c0_4 = arith.constant 0 : index
    %4 = vector.load %arg3[%c0_3, %c0_4] : memref<1x256xf32, #tpu.memory_space<vmem>>, vector<1x256xf32>
    %5 = vector.broadcast %4 : vector<1x256xf32> to vector<8x256xf32>
    %6 = arith.addf %3, %5 : vector<8x256xf32>
    %cst_5 = arith.constant 0.000000e+00 : f32
    %7 = vector.broadcast %cst_5 : f32 to vector<8x256xf32>
    %8 = arith.maximumf %6, %7 : vector<8x256xf32>
    %9 = arith.truncf %8 : vector<8x256xf32> to vector<8x256xbf16>
    %c0_6 = arith.constant 0 : index
    %c0_7 = arith.constant 0 : index
    %10 = vector.load %arg4[%c0_6, %c0_7] : memref<256x256xbf16, #tpu.memory_space<vmem>>, vector<256x256xbf16>
    %cst_8 = arith.constant dense<0.000000e+00> : vector<8x256xf32>
    %11 = tpu.matmul %9, %10, %cst_8 {dimension_numbers = #tpu.dot_dimension_numbers<[1], [0], [0], [1], [0, 0, 1, 1], [], []>} : vector<8x256xbf16>, vector<256x256xbf16>, vector<8x256xf32> -> vector<8x256xf32>
    %c0_9 = arith.constant 0 : index
    %c0_10 = arith.constant 0 : index
    %12 = vector.load %arg5[%c0_9, %c0_10] : memref<1x256xf32, #tpu.memory_space<vmem>>, vector<1x256xf32>
    %13 = vector.broadcast %12 : vector<1x256xf32> to vector<8x256xf32>
    %14 = arith.addf %11, %13 : vector<8x256xf32>
    %cst_11 = arith.constant 0.000000e+00 : f32
    %15 = vector.broadcast %cst_11 : f32 to vector<8x256xf32>
    %16 = arith.maximumf %14, %15 : vector<8x256xf32>
    %17 = arith.truncf %16 : vector<8x256xf32> to vector<8x256xbf16>
    %c0_12 = arith.constant 0 : index
    %c0_13 = arith.constant 0 : index
    %18 = vector.load %arg6[%c0_12, %c0_13] : memref<256x256xbf16, #tpu.memory_space<vmem>>, vector<256x256xbf16>
    %cst_14 = arith.constant dense<0.000000e+00> : vector<8x256xf32>
    %19 = tpu.matmul %17, %18, %cst_14 {dimension_numbers = #tpu.dot_dimension_numbers<[1], [0], [0], [1], [0, 0, 1, 1], [], []>} : vector<8x256xbf16>, vector<256x256xbf16>, vector<8x256xf32> -> vector<8x256xf32>
    %c0_15 = arith.constant 0 : index
    %c0_16 = arith.constant 0 : index
    %20 = vector.load %arg7[%c0_15, %c0_16] : memref<1x256xf32, #tpu.memory_space<vmem>>, vector<1x256xf32>
    %21 = vector.broadcast %20 : vector<1x256xf32> to vector<8x256xf32>
    %22 = arith.addf %19, %21 : vector<8x256xf32>
    %23 = vector.extract_strided_slice %22 {offsets = [0, 0], sizes = [8, 128], strides = [1, 1]} : vector<8x256xf32> to vector<8x128xf32>
    %24 = vector.extract_strided_slice %22 {offsets = [0, 128], sizes = [8, 128], strides = [1, 1]} : vector<8x256xf32> to vector<8x128xf32>
    %25 = arith.negf %24 : vector<8x128xf32>
    %26 = math.exp %25 : vector<8x128xf32>
    %cst_17 = arith.constant 1.000000e+00 : f32
    %27 = vector.broadcast %cst_17 : f32 to vector<8x128xf32>
    %28 = arith.addf %27, %26 : vector<8x128xf32>
    %29 = arith.divf %27, %28 : vector<8x128xf32>
    %cst_18 = arith.constant 4.000000e+00 : f32
    %30 = vector.broadcast %cst_18 : f32 to vector<8x128xf32>
    %31 = arith.mulf %30, %29 : vector<8x128xf32>
    %cst_19 = arith.constant -5.000000e+00 : f32
    %32 = vector.broadcast %cst_19 : f32 to vector<8x128xf32>
    %33 = arith.addf %32, %31 : vector<8x128xf32>
    %34 = math.exp %33 : vector<8x128xf32>
    %35 = arith.addf %23, %0 : vector<8x128xf32>
    %c0_20 = arith.constant 0 : index
    %c0_21 = arith.constant 0 : index
    %36 = vector.load %arg8[%c0_20, %c0_21] : memref<8x256xf32, #tpu.memory_space<vmem>>, vector<8x128xf32>
    tpu.vector_store %arg8[%c0_20, %c0_21], %35 {strides = array<i32>} : memref<8x256xf32, #tpu.memory_space<vmem>>, vector<8x128xf32>,
    %c0_22 = arith.constant 0 : index
    %c128 = arith.constant 128 : index
    %37 = vector.load %arg8[%c0_22, %c128] : memref<8x256xf32, #tpu.memory_space<vmem>>, vector<8x128xf32>
    tpu.vector_store %arg8[%c0_22, %c128], %34 {strides = array<i32>} : memref<8x256xf32, #tpu.memory_space<vmem>>, vector<8x128xf32>,
    return
  }
  func.func @transform_0(%arg0: i32) -> (i32, i32) {
    %c0_i32 = arith.constant 0 : i32
    %c0_i32_0 = arith.constant 0 : i32
    return %arg0, %c0_i32 : i32, i32
  }
  func.func @transform_1(%arg0: i32) -> (i32, i32) {
    %c0_i32 = arith.constant 0 : i32
    %c0_i32_0 = arith.constant 0 : i32
    %c0_i32_1 = arith.constant 0 : i32
    return %c0_i32, %c0_i32_0 : i32, i32
  }
  func.func @transform_2(%arg0: i32) -> (i32, i32) {
    %c0_i32 = arith.constant 0 : i32
    %c0_i32_0 = arith.constant 0 : i32
    %c0_i32_1 = arith.constant 0 : i32
    return %c0_i32, %c0_i32_0 : i32, i32
  }
  func.func @transform_3(%arg0: i32) -> (i32, i32) {
    %c0_i32 = arith.constant 0 : i32
    %c0_i32_0 = arith.constant 0 : i32
    %c0_i32_1 = arith.constant 0 : i32
    return %c0_i32, %c0_i32_0 : i32, i32
  }
  func.func @transform_4(%arg0: i32) -> (i32, i32) {
    %c0_i32 = arith.constant 0 : i32
    %c0_i32_0 = arith.constant 0 : i32
    %c0_i32_1 = arith.constant 0 : i32
    return %c0_i32, %c0_i32_0 : i32, i32
  }
  func.func @transform_5(%arg0: i32) -> (i32, i32) {
    %c0_i32 = arith.constant 0 : i32
    %c0_i32_0 = arith.constant 0 : i32
    %c0_i32_1 = arith.constant 0 : i32
    return %c0_i32, %c0_i32_0 : i32, i32
  }
  func.func @transform_6(%arg0: i32) -> (i32, i32) {
    %c0_i32 = arith.constant 0 : i32
    %c0_i32_0 = arith.constant 0 : i32
    %c0_i32_1 = arith.constant 0 : i32
    return %c0_i32, %c0_i32_0 : i32, i32
  }
  func.func @transform_7(%arg0: i32) -> (i32, i32) {
    %c0_i32 = arith.constant 0 : i32
    %c0_i32_0 = arith.constant 0 : i32
    return %arg0, %c0_i32 : i32, i32
  }
}

</mosaic_0001>

<bundles_post_ra>
// kernel: dynamics_forward.1
= control target key start
LH: loop header
LB: loop body
LE: loop exit
PB: predicated region body
PF: predicated region fallthrough
CT: control target
= control target key end

     0   :  { %12 = vsyncpa [#allocation3], 0  ;;  %s1091_s0 = inlined_call_operand.vmem [shape: f32[8,128], index: 0, kind: input, shape index: {}]   ;;  %s1092_s1 = inlined_call_operand.hbm [shape: bf16[128,256], index: 1, kind: input, shape index: {}]   ;;  %s1093_s2 = inlined_call_operand.vmem [shape: f32[1,256], index: 2, kind: input, shape index: {}]   ;;  %s1094_s3 = inlined_call_operand.hbm [shape: bf16[256,256], index: 3, kind: input, shape index: {}]   ;;  %s1095_s4 = inlined_call_operand.vmem [shape: f32[1,256], index: 4, kind: input, shape index: {}]   ;;  %s1096_s5 = inlined_call_operand.hbm [shape: bf16[256,256], index: 5, kind: input, shape index: {}]   ;;  %s1097_s6 = inlined_call_operand.vmem [shape: f32[1,256], index: 6, kind: input, shape index: {}]   ;;  %s1098_s7 = inlined_call_operand.vmem [shape: f32[8,256], index: 7, kind: output, shape index: {}]  }
   0x1   :  { %13 = vsyncpa [#allocation5], 0  ;;  %s1013_s24 = smov [#allocation4]   ;;  %s1014_s26 = smov [#allocation2]  }
   0x2   :  { %s35_s25 = sshll.u32 %s1013_s24, 4  ;;  %s21_s27 = sshll.u32 %s1014_s26, 4  ;;  %s36_s25 = int_to_ptr.vmem [resolvable:$true] %s35_s25  ;;  %s22_s27 = int_to_ptr.vmem [resolvable:$true] %s21_s27 }
   0x3   :  { %s957_s28 = scalar_lea.vmem %s36_s25, 4096  ;;  %p962_p1 = scmp.lt.s32.totalorder %s36_s25, %s36_s25 }
   0x4   :  { %p958_p0 = scmp.ne.s32.totalorder %s36_s25, %s957_s28  ;;  %p963_p2 = scmp.lt.s32.totalorder %s957_s28, %s957_s28 }
   0x6   :  { %p964_p3 = por %p963_p2, %p962_p1 }
   0x8   :  { %p965_p4 = pnand %p964_p3, %p958_p0 }
   0xa   :  { %968 = shalt.err (!%p965_p4)
}
   0xb   :  { %s1015_s29 = smov 128   ;;  %s1016_s30 = smov 8  }
   0xc   :  { %41 = dma.hbm_to_vmem [thread:$0]  %s1094_s3, 4096, %s36_s25, [#allocation5], %s1015_s29, %s1015_s29, %s1016_s30  }
   0xd   :  { %s977_s10 = scalar_lea.vmem %s22_s27, 2048  ;;  %p982_p6 = scmp.lt.s32.totalorder %s22_s27, %s22_s27 }
   0xe   :  { %p978_p5 = scmp.ne.s32.totalorder %s22_s27, %s977_s10  ;;  %p983_p7 = scmp.lt.s32.totalorder %s977_s10, %s977_s10 }
  0x10   :  { %p984_p8 = por %p983_p7, %p982_p6 }
  0x12   :  { %p985_p9 = pnand %p984_p8, %p978_p5 }
  0x14   :  { %988 = shalt.err (!%p985_p9)
}
  0x15   :  { %27 = dma.hbm_to_vmem [thread:$0]  %s1092_s1, 2048, %s22_s27, [#allocation3], %s1015_s29, %s1015_s29, %s1016_s30  }
  0x16   :  { %s1017_s13 = smov [#allocation6]  }
  0x17   :  { %s49_s14 = sshll.u32 %s1017_s13, 4  ;;  %s50_s14 = int_to_ptr.vmem [resolvable:$true] %s49_s14 }
  0x18   :  { %s997_s15 = scalar_lea.vmem %s50_s14, 4096  ;;  %p1002_p11 = scmp.lt.s32.totalorder %s50_s14, %s50_s14 }
  0x19   :  { %p998_p10 = scmp.ne.s32.totalorder %s50_s14, %s997_s15  ;;  %p1003_p12 = scmp.lt.s32.totalorder %s997_s15, %s997_s15 }
  0x1b   :  { %p1004_p13 = por %p1003_p12, %p1002_p11 }
  0x1d   :  { %p1005_p0 = pnand %p1004_p13, %p998_p10 }
  0x1f   :  { %1008 = shalt.err (!%p1005_p0)
}
  0x20   :  { %55 = dma.hbm_to_vmem [thread:$0]  %s1096_s5, 4096, %s50_s14, [#allocation5], %s1015_s29, %s1015_s29, %s1016_s30  }
  0x21   :  { %1009 = dma.done.wait [#allocation3], 2048  }
  0x22   :  { %1010 = vsyncadd [#allocation3], 4294965248 }
  0x23   :  { %1011 = dma.done.wait [#allocation5], 8192  }
  0x24   :  { %1012 = vsyncadd [#allocation5], 4294959104  ;;  %v1018_v0 = vmov 0   ;;  %v823_v1 = vld [vmem:[#allocation2 + $0x74] ss:$8 sps:$4 sm:$0xff]   ;;  %v1071_v26 = vld [vmem:[%s1091_s0] sm:$0xff] }
  0x25   :  { %210 = vmatprep.mubr.bf16.mxu0 %v1018_v0  ;;  %v825_v2 = vld [vmem:[#allocation2 + $0x70] ss:$8 sps:$4 sm:$0xff]   ;;  %178 = vmatprep.subr.bf16.mxu0 %v823_v1  ;;  %v826_v3 = vld [vmem:[#allocation2 + $0x64] ss:$8 sps:$4 sm:$0xff]   ;;  %v828_v4 = vld [vmem:[#allocation2 + $0x60] ss:$8 sps:$4 sm:$0xff]   ;;  %v69_v31 = vpack.c.bf16 %v1071_v26, %v1071_v26 }
  0x26   :  { %179 = vmatpush1.bf16.msra.mxu0 %v825_v2  ;;  %v829_v5 = vld [vmem:[#allocation2 + $0x54] ss:$8 sps:$4 sm:$0xff]   ;;  %v831_v6 = vld [vmem:[#allocation2 + $0x50] ss:$8 sps:$4 sm:$0xff]   ;;  %v832_v7 = vld [vmem:[#allocation2 + $0x44] ss:$8 sps:$4 sm:$0xff]  }
  0x27   :  { %180 = vmatprep.subr.bf16.mxu0 %v826_v3  ;;  %v834_v8 = vld [vmem:[#allocation2 + $0x40] ss:$8 sps:$4 sm:$0xff]   ;;  %v835_v9 = vld [vmem:[#allocation2 + $0x34] ss:$8 sps:$4 sm:$0xff]   ;;  %v849_v11 = vld [vmem:[#allocation4 + $0x70] ss:$8 sps:$4 sm:$0xff]  }
  0x28   :  { %v847_v10 = vld [vmem:[#allocation4 + $0x74] ss:$8 sps:$4 sm:$0xff]   ;;  %v850_v12 = vld [vmem:[#allocation4 + $0x64] ss:$8 sps:$4 sm:$0xff]   ;;  %v837_v13 = vld [vmem:[#allocation2 + $0x30] ss:$8 sps:$4 sm:$0xff]  }
  0x29   :  { %427 = vmatprep.subr.bf16.mxu1 %v847_v10  ;;  %v852_v14 = vld [vmem:[#allocation4 + $0x60] ss:$8 sps:$4 sm:$0xff]   ;;  %v853_v15 = vld [vmem:[#allocation4 + $0x54] ss:$8 sps:$4 sm:$0xff]   ;;  %v838_v16 = vld [vmem:[#allocation2 + $0x24] ss:$8 sps:$4 sm:$0xff]  }
  0x2a   :  { %181 = vmatpush1.bf16.msra.mxu0 %v828_v4  ;;  %428 = vmatpush1.bf16.msra.mxu1 %v849_v11  ;;  %v840_v17 = vld [vmem:[#allocation2 + $0x20] ss:$8 sps:$4 sm:$0xff]   ;;  %v855_v18 = vld [vmem:[#allocation4 + $0x50] ss:$8 sps:$4 sm:$0xff]   ;;  %v856_v19 = vld [vmem:[#allocation4 + $0x44] ss:$8 sps:$4 sm:$0xff]  }
  0x2b   :  { %182 = vmatprep.subr.bf16.mxu0 %v829_v5  ;;  %429 = vmatprep.subr.bf16.mxu1 %v850_v12  ;;  %v841_v20 = vld [vmem:[#allocation2 + $0x14] ss:$8 sps:$4 sm:$0xff]   ;;  %v843_v21 = vld [vmem:[#allocation2 + $0x10] ss:$8 sps:$4 sm:$0xff]   ;;  %v858_v22 = vld [vmem:[#allocation4 + $0x40] ss:$8 sps:$4 sm:$0xff]  }
  0x2c   :  { %v859_v23 = vld [vmem:[#allocation4 + $0x34] ss:$8 sps:$4 sm:$0xff]   ;;  %v844_v24 = vld [vmem:[#allocation2 + $0x4] ss:$8 sps:$4 sm:$0xff]   ;;  %v846_v25 = vld [vmem:[#allocation2] ss:$8 sps:$4 sm:$0xff]  }
  0x2d   :  { %v861_v27 = vld [vmem:[#allocation4 + $0x30] ss:$8 sps:$4 sm:$0xff]   ;;  %v862_v28 = vld [vmem:[#allocation4 + $0x24] ss:$8 sps:$4 sm:$0xff]   ;;  %v864_v29 = vld [vmem:[#allocation4 + $0x20] ss:$8 sps:$4 sm:$0xff]  }
  0x2e   :  { %183 = vmatpush1.bf16.msra.mxu0 %v831_v6  ;;  %430 = vmatpush1.bf16.msra.mxu1 %v852_v14  ;;  %v865_v30 = vld [vmem:[#allocation4 + $0x14] ss:$8 sps:$4 sm:$0xff]   ;;  %v867_v32 = vld [vmem:[#allocation4 + $0x10] ss:$8 sps:$4 sm:$0xff]   ;;  %v868_v33 = vld [vmem:[#allocation4 + $0x4] ss:$8 sps:$4 sm:$0xff]  }
  0x2f   :  { %184 = vmatprep.subr.bf16.mxu0 %v832_v7  ;;  %431 = vmatprep.subr.bf16.mxu1 %v853_v15  ;;  %v870_v34 = vld [vmem:[#allocation4] ss:$8 sps:$4 sm:$0xff]   ;;  %v871_v35 = vld [vmem:[#allocation4 + $0xf4] ss:$8 sps:$4 sm:$0xff]   ;;  %v873_v36 = vld [vmem:[#allocation4 + $0xf0] ss:$8 sps:$4 sm:$0xff]   ;;  %v88_v15 = vlaneseq }
  0x30   :  { %v874_v37 = vld [vmem:[#allocation4 + $0xe4] ss:$8 sps:$4 sm:$0xff]   ;;  %v876_v38 = vld [vmem:[#allocation4 + $0xe0] ss:$8 sps:$4 sm:$0xff]   ;;  %v877_v39 = vld [vmem:[#allocation4 + $0xd4] ss:$8 sps:$4 sm:$0xff]  }
  0x31   :  { %v879_v40 = vld [vmem:[#allocation4 + $0xd0] ss:$8 sps:$4 sm:$0xff]   ;;  %v880_v41 = vld [vmem:[#allocation4 + $0xc4] ss:$8 sps:$4 sm:$0xff]   ;;  %v882_v42 = vld [vmem:[#allocation4 + $0xc0] ss:$8 sps:$4 sm:$0xff]  }
  0x32   :  { %185 = vmatpush1.bf16.msra.mxu0 %v834_v8  ;;  %432 = vmatpush1.bf16.msra.mxu1 %v855_v18  ;;  %v883_v43 = vld [vmem:[#allocation4 + $0xb4] ss:$8 sps:$4 sm:$0xff]   ;;  %v885_v44 = vld [vmem:[#allocation4 + $0xb0] ss:$8 sps:$4 sm:$0xff]   ;;  %v886_v45 = vld [vmem:[#allocation4 + $0xa4] ss:$8 sps:$4 sm:$0xff]  }
  0x33   :  { %186 = vmatprep.subr.bf16.mxu0 %v835_v9  ;;  %433 = vmatprep.subr.bf16.mxu1 %v856_v19  ;;  %v888_v46 = vld [vmem:[#allocation4 + $0xa0] ss:$8 sps:$4 sm:$0xff]   ;;  %v889_v47 = vld [vmem:[#allocation4 + $0x94] ss:$8 sps:$4 sm:$0xff]   ;;  %v891_v48 = vld [vmem:[#allocation4 + $0x90] ss:$8 sps:$4 sm:$0xff]  }
  0x34   :  { %v892_v49 = vld [vmem:[#allocation4 + $0x84] ss:$8 sps:$4 sm:$0xff]   ;;  %v894_v50 = vld [vmem:[#allocation4 + $0x80] ss:$8 sps:$4 sm:$0xff]   ;;  %v895_v51 = vld [vmem:[#allocation6 + $0x70] ss:$8 sps:$4 sm:$0xff]  }
  0x35   :  { %v897_v52 = vld [vmem:[#allocation6 + $0x74] ss:$8 sps:$4 sm:$0xff]   ;;  %v900_v53 = vld [vmem:[#allocation6 + $0x64] ss:$8 sps:$4 sm:$0xff]   ;;  %v898_v54 = vld [vmem:[#allocation6 + $0x60] ss:$8 sps:$4 sm:$0xff]  }
  0x36   :  { %187 = vmatpush1.bf16.msra.mxu0 %v837_v13  ;;  %434 = vmatpush1.bf16.msra.mxu1 %v858_v22  ;;  %v903_v55 = vld [vmem:[#allocation6 + $0x54] ss:$8 sps:$4 sm:$0xff]   ;;  %v901_v56 = vld [vmem:[#allocation6 + $0x50] ss:$8 sps:$4 sm:$0xff]   ;;  %v906_v57 = vld [vmem:[#allocation6 + $0x44] ss:$8 sps:$4 sm:$0xff]  }
  0x37   :  { %188 = vmatprep.subr.bf16.mxu0 %v838_v16  ;;  %435 = vmatprep.subr.bf16.mxu1 %v859_v23  ;;  %v904_v58 = vld [vmem:[#allocation6 + $0x40] ss:$8 sps:$4 sm:$0xff]   ;;  %v909_v59 = vld [vmem:[#allocation6 + $0x34] ss:$8 sps:$4 sm:$0xff]   ;;  %v907_v60 = vld [vmem:[#allocation6 + $0x30] ss:$8 sps:$4 sm:$0xff]  }
  0x38   :  { %v912_v61 = vld [vmem:[#allocation6 + $0x24] ss:$8 sps:$4 sm:$0xff]   ;;  %v910_v62 = vld [vmem:[#allocation6 + $0x20] ss:$8 sps:$4 sm:$0xff]   ;;  %v915_v63 = vld [vmem:[#allocation6 + $0x14] ss:$8 sps:$4 sm:$0xff]  }
  0x39   :  { %v913_v0 = vld [vmem:[#allocation6 + $0x10] ss:$8 sps:$4 sm:$0xff]   ;;  %v918_v1 = vld [vmem:[#allocation6 + $0x4] ss:$8 sps:$4 sm:$0xff]   ;;  %v916_v2 = vld [vmem:[#allocation6] ss:$8 sps:$4 sm:$0xff]  }
  0x3a   :  { %189 = vmatpush1.bf16.msra.mxu0 %v840_v17  ;;  %436 = vmatpush1.bf16.msra.mxu1 %v861_v27  ;;  %v921_v3 = vld [vmem:[#allocation6 + $0xf4] ss:$8 sps:$4 sm:$0xff]   ;;  %v919_v4 = vld [vmem:[#allocation6 + $0xf0] ss:$8 sps:$4 sm:$0xff]   ;;  %v924_v5 = vld [vmem:[#allocation6 + $0xe4] ss:$8 sps:$4 sm:$0xff]  }
  0x3b   :  { %190 = vmatprep.subr.bf16.mxu0 %v841_v20  ;;  %437 = vmatprep.subr.bf16.mxu1 %v862_v28  ;;  %v922_v6 = vld [vmem:[#allocation6 + $0xe0] ss:$8 sps:$4 sm:$0xff]   ;;  %v927_v7 = vld [vmem:[#allocation6 + $0xd4] ss:$8 sps:$4 sm:$0xff]   ;;  %v925_v8 = vld [vmem:[#allocation6 + $0xd0] ss:$8 sps:$4 sm:$0xff]  }
  0x3c   :  { %v930_v9 = vld [vmem:[#allocation6 + $0xc4] ss:$8 sps:$4 sm:$0xff]   ;;  %v928_v10 = vld [vmem:[#allocation6 + $0xc0] ss:$8 sps:$4 sm:$0xff]   ;;  %v933_v11 = vld [vmem:[#allocation6 + $0xb4] ss:$8 sps:$4 sm:$0xff]  }
  0x3d   :  { %v931_v12 = vld [vmem:[#allocation6 + $0xb0] ss:$8 sps:$4 sm:$0xff]   ;;  %v936_v13 = vld [vmem:[#allocation6 + $0xa4] ss:$8 sps:$4 sm:$0xff]   ;;  %v934_v14 = vld [vmem:[#allocation6 + $0xa0] ss:$8 sps:$4 sm:$0xff]  }
  0x3e   :  { %191 = vmatpush1.bf16.msra.mxu0 %v843_v21  ;;  %438 = vmatpush1.bf16.msra.mxu1 %v864_v29  ;;  %v89_v16 = vshrl.u32 %v88_v15, 7  ;;  %v86_v18 = vld [vmem:[%s1093_s2] sm:$0x3] }
  0x3f   :  { %192 = vmatprep.subr.bf16.mxu0 %v844_v24  ;;  %439 = vmatprep.subr.bf16.mxu1 %v865_v30 }
  0x40   :  { %v90_v17 = vsub.s32 0, %v89_v16  ;;  %v94_v19 = vsub.s32 1, %v89_v16 }
  0x42   :  { %193 = vmatpush1.bf16.msra.mxu0 %v846_v25  ;;  %440 = vmatpush1.bf16.msra.mxu1 %v867_v32  ;;  %v91_v20 = vrot.slane %v86_v18, %v90_v17  ;;  %v95_v21 = vrot.slane %v86_v18, %v94_v19 }
  0x43   :  { %441 = vmatprep.subr.bf16.mxu1 %v868_v33  ;;  %676 = vmatprep.subr.bf16.mxu0 %v897_v52  ;;  %v939_v33 = vld [vmem:[#allocation6 + $0x94] ss:$8 sps:$4 sm:$0xff]  }
  0x45   :  { %211 = vmatmul.mubr.bf16.vlgmr.msra.gmra.mxu0 %v69_v31 }
  0x46   :  { %442 = vmatpush1.bf16.msra.mxu1 %v870_v34  ;;  %677 = vmatpush1.bf16.msra.mxu0 %v895_v51  ;;  %v937_v34 = vld [vmem:[#allocation6 + $0x90] ss:$8 sps:$4 sm:$0xff]  }
  0x47   :  { %443 = vmatprep.subr.bf16.mxu1 %v871_v35  ;;  %678 = vmatprep.subr.bf16.mxu0 %v900_v53  ;;  %v942_v35 = vld [vmem:[#allocation6 + $0x84] ss:$8 sps:$4 sm:$0xff]  }
  0x4a   :  { %444 = vmatpush2.bf16.msra.mxu1 %v873_v36  ;;  %679 = vmatpush1.bf16.msra.mxu0 %v898_v54  ;;  %v940_v36 = vld [vmem:[#allocation6 + $0x80] ss:$8 sps:$4 sm:$0xff]  }
  0x4b   :  { %445 = vmatprep.subr.bf16.mxu1 %v874_v37  ;;  %680 = vmatprep.subr.bf16.mxu0 %v903_v55  ;;  %v255_v37 = vld [vmem:[%s1095_s4] sm:$0x3] }
  0x4e   :  { %446 = vmatpush2.bf16.msra.mxu1 %v876_v38  ;;  %681 = vmatpush1.bf16.msra.mxu0 %v901_v56  ;;  %v260_v38 = vrot.slane %v255_v37, %v90_v17 }
  0x4f   :  { %447 = vmatprep.subr.bf16.mxu1 %v877_v39  ;;  %682 = vmatprep.subr.bf16.mxu0 %v906_v57  ;;  %v264_v39 = vrot.slane %v255_v37, %v94_v19 }
  0x52   :  { %448 = vmatpush2.bf16.msra.mxu1 %v879_v40  ;;  %683 = vmatpush1.bf16.msra.mxu0 %v904_v58 }
  0x53   :  { %449 = vmatprep.subr.bf16.mxu1 %v880_v41  ;;  %684 = vmatprep.subr.bf16.mxu0 %v909_v59 }
  0x56   :  { %450 = vmatpush2.bf16.msra.mxu1 %v882_v42  ;;  %685 = vmatpush1.bf16.msra.mxu0 %v907_v60 }
  0x57   :  { %451 = vmatprep.subr.bf16.mxu1 %v883_v43  ;;  %686 = vmatprep.subr.bf16.mxu0 %v912_v61 }
  0x5a   :  { %452 = vmatpush2.bf16.msra.mxu1 %v885_v44  ;;  %687 = vmatpush1.bf16.msra.mxu0 %v910_v62 }
  0x5b   :  { %453 = vmatprep.subr.bf16.mxu1 %v886_v45  ;;  %688 = vmatprep.subr.bf16.mxu0 %v915_v63 }
  0x5e   :  { %454 = vmatpush2.bf16.msra.mxu1 %v888_v46  ;;  %689 = vmatpush1.bf16.msra.mxu0 %v913_v0 }
  0x5f   :  { %455 = vmatprep.subr.bf16.mxu1 %v889_v47  ;;  %690 = vmatprep.subr.bf16.mxu0 %v918_v1 }
  0x62   :  { %456 = vmatpush2.bf16.msra.mxu1 %v891_v48  ;;  %691 = vmatpush1.bf16.msra.mxu0 %v916_v2 }
  0x63   :  { %457 = vmatprep.subr.bf16.mxu1 %v892_v49  ;;  %692 = vmatprep.subr.bf16.mxu0 %v921_v3 }
  0x66   :  { %458 = vmatpush2.bf16.msra.mxu1 %v894_v50  ;;  %693 = vmatpush2.bf16.msra.mxu0 %v919_v4  ;;  %v504_v50 = vld [vmem:[%s1097_s6] sm:$0x3] }
  0x67   :  { %694 = vmatprep.subr.bf16.mxu0 %v924_v5  ;;  %v509_v51 = vrot.slane %v504_v50, %v90_v17  ;;  %v513_v52 = vrot.slane %v504_v50, %v94_v19 }
  0x6a   :  { %695 = vmatpush2.bf16.msra.mxu0 %v922_v6 }
  0x6b   :  { %696 = vmatprep.subr.bf16.mxu0 %v927_v7 }
  0x6e   :  { %697 = vmatpush2.bf16.msra.mxu0 %v925_v8 }
  0x6f   :  { %698 = vmatprep.subr.bf16.mxu0 %v930_v9 }
  0x72   :  { %699 = vmatpush2.bf16.msra.mxu0 %v928_v10 }
  0x73   :  { %700 = vmatprep.subr.bf16.mxu0 %v933_v11 }
  0x76   :  { %701 = vmatpush2.bf16.msra.mxu0 %v931_v12 }
  0x77   :  { %702 = vmatprep.subr.bf16.mxu0 %v936_v13 }
  0x7a   :  { %703 = vmatpush2.bf16.msra.mxu0 %v934_v14 }
  0x7b   :  { %704 = vmatprep.subr.bf16.mxu0 %v939_v33 }
  0x7e   :  { %705 = vmatpush2.bf16.msra.mxu0 %v937_v34 }
  0x7f   :  { %706 = vmatprep.subr.bf16.mxu0 %v942_v35 }
  0x82   :  { %707 = vmatpush2.bf16.msra.mxu0 %v940_v36 }
 0x105   :  { %v212_v22 = vpop.f32.mrf.mxu0 }
 0x106   :  { %v213_v23 = vadd.f32 %v212_v22, %v91_v20 }
 0x107   :  { %v214_v24 = vpop.f32.mrf.mxu0 }
 0x108   :  { %v215_v25 = vadd.f32 %v214_v24, %v95_v21  ;;  %v219_v27 = vmax.f32 %v213_v23, 0.0 }
 0x109   :  { %v216_v28 = vpop.f32.mrf.mxu0 }
 0x10a   :  { %v220_v29 = vmax.f32 %v215_v25, 0.0  ;;  %v221_v32 = vpack.c.bf16 %v219_v27, %v219_v27 }
 0x10b   :  { %v217_v30 = vpop.f32.mrf.mxu0 }
 0x10c   :  { %v222_v31 = vpack.c.bf16 %v220_v29, %v220_v29 }
 0x10e   :  { %459 = vmatprep.mubr.bf16.mxu1 %v222_v31 }
 0x10f   :  { %460 = vmatmul.mubr.bf16.vlgmr.msra.gmra.mxu1 %v221_v32 }
 0x1cf   :  { %v461_v40 = vpop.f32.mrf.mxu1 }
 0x1d0   :  { %v462_v41 = vadd.f32 %v461_v40, %v260_v38 }
 0x1d1   :  { %v463_v42 = vpop.f32.mrf.mxu1 }
 0x1d2   :  { %v464_v43 = vadd.f32 %v463_v42, %v264_v39  ;;  %v468_v44 = vmax.f32 %v462_v41, 0.0 }
 0x1d3   :  { %v465_v45 = vpop.f32.mrf.mxu1 }
 0x1d4   :  { %v469_v46 = vmax.f32 %v464_v43, 0.0  ;;  %v470_v49 = vpack.c.bf16 %v468_v44, %v468_v44 }
 0x1d5   :  { %v466_v47 = vpop.f32.mrf.mxu1 }
 0x1d6   :  { %v471_v48 = vpack.c.bf16 %v469_v46, %v469_v46 }
 0x1d8   :  { %708 = vmatprep.mubr.bf16.mxu0 %v471_v48 }
 0x1d9   :  { %709 = vmatmul.mubr.bf16.vlgmr.msra.gmra.mxu0 %v470_v49 }
 0x299   :  { %v710_v53 = vpop.f32.mrf.mxu0 }
 0x29a   :  { %v711_v54 = vadd.f32 %v710_v53, %v509_v51 }
 0x29b   :  { %v712_v55 = vpop.f32.mrf.mxu0 }
 0x29c   :  { %v727_v56 = vadd.f32 %v711_v54, %v1071_v26  ;;  %v713_v57 = vadd.f32 %v712_v55, %v513_v52 }
 0x29d   :  { %v714_v58 = vpop.f32.mrf.mxu0 }
 0x29e   :  { %728 = vst [vmem:[%s1098_s7] sm:$0xff] %v727_v56  ;;  %v816_v59 = vmul.f32 -1.442695, %v713_v57 }
 0x29f   :  { %v715_v60 = vpop.f32.mrf.mxu0 }
 0x2a0   :  { %943 = vpow2.f32 %v816_v59 }
 0x2ad   :  { %v944_v61 = vpop.eup %943 }
 0x2ae   :  { %v720_v62 = vadd.f32 1.0, %v944_v61 }
 0x2b0   :  { %945 = vrcp.f32 %v720_v62 }
 0x2bd   :  { %v946_v63 = vpop.eup %945 }
 0x2be   :  { %v723_v0 = vmul.f32 4.0, %v946_v63 }
 0x2c0   :  { %v724_v1 = vadd.f32 -5.0, %v723_v0 }
 0x2c2   :  { %v725_v2 = vmul.f32 1.442695, %v724_v1 }
 0x2c4   :  { %947 = vpow2.f32 %v725_v2 }
 0x2d1   :  { %v948_v3 = vpop.eup %947 }
 0x2d2   :  { %729 = vst [vmem:[%s1098_s7 + $0x8] sm:$0xff] %v948_v3 }
 0x2d3   :  { %734 = vsyncpa [#allocation3], 1 }
 0x2d4   :  { %735 = vsyncpa [#allocation5], 1 }

</bundles_post_ra>
